<compile_context>
chip_gen: v7x
topology: tpu7x:2x2x1
jax: 0.10.0
libtpu: 0.0.40
codegen_flags: <defaults>
</compile_context>

<pallas_src>
import functools

import jax
import jax.numpy as jnp
from jax.experimental import pallas as pl
from jax.experimental.pallas import tpu as pltpu


def _round_up(x, m):
    return ((x + m - 1) // m) * m


def _slab_layout(in_dim, hidden):
    """Row offsets of each transposed weight inside the packed weight slab."""
    r_we = 0
    r_qkv = _round_up(r_we + in_dim, 8)
    r_wo = _round_up(r_qkv + hidden, 8)
    r_w1 = _round_up(r_wo + hidden, 8)
    r_w2 = _round_up(r_w1 + hidden, 8)
    r_tot = _round_up(r_w2 + hidden, 8)
    return r_we, r_qkv, r_wo, r_w1, r_w2, r_tot


def prepare_params(params, num_heads):
    """One-time repack of PyTorch-layout weights into two lane-dense slabs.

    Call once outside the per-step path; the jitted forward only consumes the
    packed slabs (no per-call tiling / transposing / padding of weights).
    """
    H, Din = params["we"].shape
    Dout = params["w2"].shape[0]
    hd = H // num_heads
    scale = 1.0 / float(hd) ** 0.5
    lane_w = _round_up(max(3 * H, Dout, 128), 128)
    r_we, r_qkv, r_wo, r_w1, r_w2, r_tot = _slab_layout(Din, H)

    # Fused QKV weight, transposed, softmax scale folded into the q columns.
    wqkv_t = params["wqkv"].T                                   # (H, 3H)
    wqkv_t = jnp.concatenate([wqkv_t[:, :H] * scale, wqkv_t[:, H:]], axis=1)

    w = jnp.zeros((r_tot, lane_w), jnp.float32)
    w = w.at[r_we:r_we + Din, :H].set(params["we"].T)
    w = w.at[r_qkv:r_qkv + H, :3 * H].set(wqkv_t)
    w = w.at[r_wo:r_wo + H, :H].set(params["wo"].T)
    w = w.at[r_w1:r_w1 + H, :H].set(params["w1"].T)
    w = w.at[r_w2:r_w2 + H, :Dout].set(params["w2"].T)          # zero-padded lanes

    bqkv = params["bqkv"]
    bqkv = jnp.concatenate([bqkv[:H] * scale, bqkv[H:]])
    b = jnp.zeros((8, lane_w), jnp.float32)
    b = b.at[0, :H].set(params["be"])
    b = b.at[1, :3 * H].set(bqkv)
    b = b.at[2, :H].set(params["bo"])
    b = b.at[3, :H].set(params["b1"])
    b = b.at[4, :Dout].set(params["b2"])                        # padded lanes stay 0
    return jax.device_put(w), jax.device_put(b)


def adaptanet_kernel(x_ref, w_ref, b_ref, out_ref, *,
                     batch, seq, in_dim, hidden, num_heads):
    hd = hidden // num_heads
    r_we, r_qkv, r_wo, r_w1, r_w2, _ = _slab_layout(in_dim, hidden)
    lane_w = out_ref.shape[-1]
    f32 = jnp.float32

    x = x_ref[...]                                              # (B*S, Din)

    # Embedding: single 2-D matmul with an un-replicated weight.
    e = jnp.dot(x, w_ref[r_we:r_we + in_dim, 0:hidden],
                preferred_element_type=f32) + b_ref[0:1, 0:hidden]      # (B*S, H)

    # Fused QKV projection (scale already folded into q columns / bias).
    qkv = jnp.dot(e, w_ref[r_qkv:r_qkv + hidden, 0:3 * hidden],
                  preferred_element_type=f32) + b_ref[1:2, 0:3 * hidden]
    q = qkv[:, 0:hidden]
    k = qkv[:, hidden:2 * hidden]
    v = qkv[:, 2 * hidden:3 * hidden]

    # Scaled dot-product attention: the only head-batched step.  B*nh = 8
    # tiny (S,hd) blocks sliced directly out of the lane-packed q/k/v
    # (no (Z,S,hd) relayout, no replicated embeddings), fully unrolled.
    ctx_rows = []
    for bi in range(batch):
        r0 = bi * seq
        head_ctx = []
        for n in range(num_heads):
            c0 = n * hd
            qn = q[r0:r0 + seq, c0:c0 + hd]                     # (S, hd)
            kn = k[r0:r0 + seq, c0:c0 + hd]
            vn = v[r0:r0 + seq, c0:c0 + hd]
            s = jax.lax.dot_general(qn, kn, (((1,), (1,)), ((), ())),
                                    preferred_element_type=f32)  # (S, S) = Q K^T
            s = s - jnp.max(s, axis=-1, keepdims=True)
            p = jnp.exp(s)
            p = p * pl.reciprocal(jnp.sum(p, axis=-1, keepdims=True), approx=True)
            head_ctx.append(jnp.dot(p, vn, preferred_element_type=f32))
        ctx_rows.append(jnp.concatenate(head_ctx, axis=-1))     # (S, H)
    ctx = jnp.concatenate(ctx_rows, axis=0)                     # (B*S, H)

    # Attention out-projection + FFN: plain 2-D matmuls, heads packed in lanes.
    a = jnp.dot(ctx, w_ref[r_wo:r_wo + hidden, 0:hidden],
                preferred_element_type=f32) + b_ref[2:3, 0:hidden]
    h1 = jnp.maximum(
        jnp.dot(a, w_ref[r_w1:r_w1 + hidden, 0:hidden],
                preferred_element_type=f32) + b_ref[3:4, 0:hidden], 0.0)
    out = jnp.dot(h1, w_ref[r_w2:r_w2 + hidden, 0:lane_w],
                  preferred_element_type=f32) + b_ref[4:5, 0:lane_w]
    out_ref[...] = out.astype(out_ref.dtype)                    # (16, 128): 2 full vregs


def adaptanet_forward(x_sbd, wslab, bslab, *, num_heads, hidden_dim, out_dim):
    """x_sbd: (seq, batch, input_dim) float32 (PyTorch MultiheadAttention layout)."""
    S, B, Din = x_sbd.shape
    lane_w = wslab.shape[1]
    x2 = jnp.transpose(x_sbd, (1, 0, 2)).reshape(B * S, Din)    # rows = (batch, seq)

    kernel = functools.partial(
        adaptanet_kernel, batch=B, seq=S, in_dim=Din,
        hidden=hidden_dim, num_heads=num_heads)
    vmem = pl.BlockSpec(memory_space=pltpu.MemorySpace.VMEM)

    out = pl.pallas_call(
        kernel,
        out_shape=jax.ShapeDtypeStruct((B * S, lane_w), jnp.float32),
        in_specs=[vmem, vmem, vmem],
        out_specs=vmem,
    )(x2, wslab, bslab)

    out = out[:, :out_dim].reshape(B, S, out_dim)
    return jnp.transpose(out, (1, 0, 2))                        # (S, B, Dout)


def reference_forward(x_sbd, params, num_heads):
    """Pure-JAX reference mirroring PyTorch semantics, for validation."""
    S, B, Din = x_sbd.shape
    H = params["we"].shape[0]
    hd = H // num_heads
    e = jnp.einsum("sbi,hi->sbh", x_sbd, params["we"]) + params["be"]
    qkv = jnp.einsum("sbh,oh->sbo", e, params["wqkv"]) + params["bqkv"]
    q, k, v = qkv[..., :H], qkv[..., H:2 * H], qkv[..., 2 * H:]

    def split_heads(t):  # (S, B, H) -> (B, nh, S, hd)
        return jnp.transpose(t.reshape(S, B, num_heads, hd), (1, 2, 0, 3))

    qh, kh, vh = split_heads(q), split_heads(k), split_heads(v)
    scores = jnp.einsum("bnqd,bnkd->bnqk", qh, kh) / jnp.sqrt(float(hd))
    attn = jax.nn.softmax(scores, axis=-1)
    ctx = jnp.einsum("bnqk,bnkd->bnqd", attn, vh)               # (B, nh, S, hd)
    ctx = jnp.transpose(ctx, (2, 0, 1, 3)).reshape(S, B, H)
    ao = jnp.einsum("sbh,oh->sbo", ctx, params["wo"]) + params["bo"]
    h1 = jax.nn.relu(jnp.einsum("sbh,oh->sbo", ao, params["w1"]) + params["b1"])
    return jnp.einsum("sbh,oh->sbo", h1, params["w2"]) + params["b2"]


def make_params(key, input_dim, hidden_dim, output_dim):
    ks = jax.random.split(key, 10)
    init = lambda k, shape, fan_in: (jax.random.uniform(
        k, shape, jnp.float32, -1.0, 1.0) / jnp.sqrt(float(fan_in)))
    return {
        "we":   init(ks[0], (hidden_dim, input_dim), input_dim),
        "be":   init(ks[1], (hidden_dim,), input_dim),
        "wqkv": init(ks[2], (3 * hidden_dim, hidden_dim), hidden_dim),
        "bqkv": init(ks[3], (3 * hidden_dim,), hidden_dim),
        "wo":   init(ks[4], (hidden_dim, hidden_dim), hidden_dim),
        "bo":   init(ks[5], (hidden_dim,), hidden_dim),
        "w1":   init(ks[6], (hidden_dim, hidden_dim), hidden_dim),
        "b1":   init(ks[7], (hidden_dim,), hidden_dim),
        "w2":   init(ks[8], (output_dim, hidden_dim), hidden_dim),
        "b2":   init(ks[9], (output_dim,), hidden_dim),
    }


if __name__ == "__main__":
    # Small shapes consistent with the module's forward:
    # x: (seq=8, batch=2, input_dim=16), hidden=32, output=16, heads=4.
    SEQ, BATCH, INPUT_DIM = 8, 2, 16
    HIDDEN_DIM, OUTPUT_DIM, NUM_HEADS = 32, 16, 4
    # NUM_LAYERS is accepted by the PyTorch __init__ but never used in forward.

    key = jax.random.PRNGKey(0)
    k_x, k_p = jax.random.split(key)
    x = jax.random.normal(k_x, (SEQ, BATCH, INPUT_DIM), jnp.float32)
    params = make_params(k_p, INPUT_DIM, HIDDEN_DIM, OUTPUT_DIM)

    # One-time weight repack (outside the per-call jit path).
    wslab, bslab = prepare_params(params, NUM_HEADS)

    fwd = jax.jit(functools.partial(
        adaptanet_forward, num_heads=NUM_HEADS,
        hidden_dim=HIDDEN_DIM, out_dim=OUTPUT_DIM))
    out = jax.block_until_ready(fwd(x, wslab, bslab))

    ref = reference_forward(x, params, NUM_HEADS)
    assert out.shape == (SEQ, BATCH, OUTPUT_DIM), out.shape
    # Tolerance covers the EUP approximate-reciprocal used in the softmax.
    assert jnp.allclose(out, ref, atol=3e-3, rtol=3e-3), \
        float(jnp.max(jnp.abs(out - ref)))

    print("KERNEL_OK")
</pallas_src>

<mosaic_0001>
module attributes {stable_mosaic.version = 11 : i64} {
  func.func @adaptanet_kernel(%arg0: memref<16x16xf32, #tpu.memory_space<vmem>>, %arg1: memref<144x128xf32, #tpu.memory_space<vmem>>, %arg2: memref<8x128xf32, #tpu.memory_space<vmem>>, %arg3: memref<16x128xf32, #tpu.memory_space<vmem>>) attributes {dimension_semantics = [], scalar_prefetch = 0 : i64, scratch_operands = 0 : i64, tpu.core_type = #tpu.core_type<tc>} {
    %c0 = arith.constant 0 : index
    %c0_0 = arith.constant 0 : index
    %0 = vector.load %arg0[%c0, %c0_0] : memref<16x16xf32, #tpu.memory_space<vmem>>, vector<16x16xf32>
    %c0_1 = arith.constant 0 : index
    %c0_2 = arith.constant 0 : index
    %1 = vector.load %arg1[%c0_1, %c0_2] : memref<144x128xf32, #tpu.memory_space<vmem>>, vector<16x32xf32>
    %cst = arith.constant dense<0.000000e+00> : vector<16x32xf32>
    %2 = tpu.matmul %0, %1, %cst {dimension_numbers = #tpu.dot_dimension_numbers<[1], [0], [0], [1], [0, 0, 1, 1], [], []>} : vector<16x16xf32>, vector<16x32xf32>, vector<16x32xf32> -> vector<16x32xf32>
    %c0_3 = arith.constant 0 : index
    %c0_4 = arith.constant 0 : index
    %3 = vector.load %arg2[%c0_3, %c0_4] : memref<8x128xf32, #tpu.memory_space<vmem>>, vector<1x32xf32>
    %4 = vector.broadcast %3 : vector<1x32xf32> to vector<16x32xf32>
    %5 = arith.addf %2, %4 : vector<16x32xf32>
    %c16 = arith.constant 16 : index
    %c0_5 = arith.constant 0 : index
    %6 = vector.load %arg1[%c16, %c0_5] : memref<144x128xf32, #tpu.memory_space<vmem>>, vector<32x96xf32>
    %cst_6 = arith.constant dense<0.000000e+00> : vector<16x96xf32>
    %7 = tpu.matmul %5, %6, %cst_6 {dimension_numbers = #tpu.dot_dimension_numbers<[1], [0], [0], [1], [0, 0, 1, 1], [], []>} : vector<16x32xf32>, vector<32x96xf32>, vector<16x96xf32> -> vector<16x96xf32>
    %c1 = arith.constant 1 : index
    %c0_7 = arith.constant 0 : index
    %8 = vector.load %arg2[%c1, %c0_7] : memref<8x128xf32, #tpu.memory_space<vmem>>, vector<1x96xf32>
    %9 = vector.broadcast %8 : vector<1x96xf32> to vector<16x96xf32>
    %10 = arith.addf %7, %9 : vector<16x96xf32>
    %11 = vector.extract_strided_slice %10 {offsets = [0, 0], sizes = [16, 32], strides = [1, 1]} : vector<16x96xf32> to vector<16x32xf32>
    %12 = vector.extract_strided_slice %10 {offsets = [0, 32], sizes = [16, 32], strides = [1, 1]} : vector<16x96xf32> to vector<16x32xf32>
    %13 = vector.extract_strided_slice %10 {offsets = [0, 64], sizes = [16, 32], strides = [1, 1]} : vector<16x96xf32> to vector<16x32xf32>
    %14 = vector.extract_strided_slice %11 {offsets = [0, 0], sizes = [8, 8], strides = [1, 1]} : vector<16x32xf32> to vector<8x8xf32>
    %15 = vector.extract_strided_slice %12 {offsets = [0, 0], sizes = [8, 8], strides = [1, 1]} : vector<16x32xf32> to vector<8x8xf32>
    %16 = vector.extract_strided_slice %13 {offsets = [0, 0], sizes = [8, 8], strides = [1, 1]} : vector<16x32xf32> to vector<8x8xf32>
    %cst_8 = arith.constant dense<0.000000e+00> : vector<8x8xf32>
    %17 = tpu.matmul %14, %15, %cst_8 {dimension_numbers = #tpu.dot_dimension_numbers<[1], [1], [0], [0], [0, 0, 1, 0], [], []>} : vector<8x8xf32>, vector<8x8xf32>, vector<8x8xf32> -> vector<8x8xf32>
    %cst_9 = arith.constant dense<0xFF800000> : vector<8xf32>
    %18 = vector.multi_reduction <maximumf>, %17, %cst_9 [1] : vector<8x8xf32> to vector<8xf32>
    %19 = vector.shape_cast %18 : vector<8xf32> to vector<8x1xf32>
    %20 = vector.broadcast %19 : vector<8x1xf32> to vector<8x8xf32>
    %21 = arith.subf %17, %20 : vector<8x8xf32>
    %22 = math.exp %21 : vector<8x8xf32>
    %cst_10 = arith.constant dense<0.000000e+00> : vector<8xf32>
    %23 = vector.multi_reduction <add>, %22, %cst_10 [1] : vector<8x8xf32> to vector<8xf32>
    %24 = vector.shape_cast %23 : vector<8xf32> to vector<8x1xf32>
    %25 = tpu.reciprocal %24 {approx = true} : vector<8x1xf32> -> vector<8x1xf32>
    %26 = vector.broadcast %25 : vector<8x1xf32> to vector<8x8xf32>
    %27 = arith.mulf %22, %26 : vector<8x8xf32>
    %cst_11 = arith.constant dense<0.000000e+00> : vector<8x8xf32>
    %28 = tpu.matmul %27, %16, %cst_11 {dimension_numbers = #tpu.dot_dimension_numbers<[1], [0], [0], [1], [0, 0, 1, 1], [], []>} : vector<8x8xf32>, vector<8x8xf32>, vector<8x8xf32> -> vector<8x8xf32>
    %29 = vector.extract_strided_slice %11 {offsets = [0, 8], sizes = [8, 8], strides = [1, 1]} : vector<16x32xf32> to vector<8x8xf32>
    %30 = vector.extract_strided_slice %12 {offsets = [0, 8], sizes = [8, 8], strides = [1, 1]} : vector<16x32xf32> to vector<8x8xf32>
    %31 = vector.extract_strided_slice %13 {offsets = [0, 8], sizes = [8, 8], strides = [1, 1]} : vector<16x32xf32> to vector<8x8xf32>
    %cst_12 = arith.constant dense<0.000000e+00> : vector<8x8xf32>
    %32 = tpu.matmul %29, %30, %cst_12 {dimension_numbers = #tpu.dot_dimension_numbers<[1], [1], [0], [0], [0, 0, 1, 0], [], []>} : vector<8x8xf32>, vector<8x8xf32>, vector<8x8xf32> -> vector<8x8xf32>
    %cst_13 = arith.constant dense<0xFF800000> : vector<8xf32>
    %33 = vector.multi_reduction <maximumf>, %32, %cst_13 [1] : vector<8x8xf32> to vector<8xf32>
    %34 = vector.shape_cast %33 : vector<8xf32> to vector<8x1xf32>
    %35 = vector.broadcast %34 : vector<8x1xf32> to vector<8x8xf32>
    %36 = arith.subf %32, %35 : vector<8x8xf32>
    %37 = math.exp %36 : vector<8x8xf32>
    %cst_14 = arith.constant dense<0.000000e+00> : vector<8xf32>
    %38 = vector.multi_reduction <add>, %37, %cst_14 [1] : vector<8x8xf32> to vector<8xf32>
    %39 = vector.shape_cast %38 : vector<8xf32> to vector<8x1xf32>
    %40 = tpu.reciprocal %39 {approx = true} : vector<8x1xf32> -> vector<8x1xf32>
    %41 = vector.broadcast %40 : vector<8x1xf32> to vector<8x8xf32>
    %42 = arith.mulf %37, %41 : vector<8x8xf32>
    %cst_15 = arith.constant dense<0.000000e+00> : vector<8x8xf32>
    %43 = tpu.matmul %42, %31, %cst_15 {dimension_numbers = #tpu.dot_dimension_numbers<[1], [0], [0], [1], [0, 0, 1, 1], [], []>} : vector<8x8xf32>, vector<8x8xf32>, vector<8x8xf32> -> vector<8x8xf32>
    %44 = vector.extract_strided_slice %11 {offsets = [0, 16], sizes = [8, 8], strides = [1, 1]} : vector<16x32xf32> to vector<8x8xf32>
    %45 = vector.extract_strided_slice %12 {offsets = [0, 16], sizes = [8, 8], strides = [1, 1]} : vector<16x32xf32> to vector<8x8xf32>
    %46 = vector.extract_strided_slice %13 {offsets = [0, 16], sizes = [8, 8], strides = [1, 1]} : vector<16x32xf32> to vector<8x8xf32>
    %cst_16 = arith.constant dense<0.000000e+00> : vector<8x8xf32>
    %47 = tpu.matmul %44, %45, %cst_16 {dimension_numbers = #tpu.dot_dimension_numbers<[1], [1], [0], [0], [0, 0, 1, 0], [], []>} : vector<8x8xf32>, vector<8x8xf32>, vector<8x8xf32> -> vector<8x8xf32>
    %cst_17 = arith.constant dense<0xFF800000> : vector<8xf32>
    %48 = vector.multi_reduction <maximumf>, %47, %cst_17 [1] : vector<8x8xf32> to vector<8xf32>
    %49 = vector.shape_cast %48 : vector<8xf32> to vector<8x1xf32>
    %50 = vector.broadcast %49 : vector<8x1xf32> to vector<8x8xf32>
    %51 = arith.subf %47, %50 : vector<8x8xf32>
    %52 = math.exp %51 : vector<8x8xf32>
    %cst_18 = arith.constant dense<0.000000e+00> : vector<8xf32>
    %53 = vector.multi_reduction <add>, %52, %cst_18 [1] : vector<8x8xf32> to vector<8xf32>
    %54 = vector.shape_cast %53 : vector<8xf32> to vector<8x1xf32>
    %55 = tpu.reciprocal %54 {approx = true} : vector<8x1xf32> -> vector<8x1xf32>
    %56 = vector.broadcast %55 : vector<8x1xf32> to vector<8x8xf32>
    %57 = arith.mulf %52, %56 : vector<8x8xf32>
    %cst_19 = arith.constant dense<0.000000e+00> : vector<8x8xf32>
    %58 = tpu.matmul %57, %46, %cst_19 {dimension_numbers = #tpu.dot_dimension_numbers<[1], [0], [0], [1], [0, 0, 1, 1], [], []>} : vector<8x8xf32>, vector<8x8xf32>, vector<8x8xf32> -> vector<8x8xf32>
    %59 = vector.extract_strided_slice %11 {offsets = [0, 24], sizes = [8, 8], strides = [1, 1]} : vector<16x32xf32> to vector<8x8xf32>
    %60 = vector.extract_strided_slice %12 {offsets = [0, 24], sizes = [8, 8], strides = [1, 1]} : vector<16x32xf32> to vector<8x8xf32>
    %61 = vector.extract_strided_slice %13 {offsets = [0, 24], sizes = [8, 8], strides = [1, 1]} : vector<16x32xf32> to vector<8x8xf32>
    %cst_20 = arith.constant dense<0.000000e+00> : vector<8x8xf32>
    %62 = tpu.matmul %59, %60, %cst_20 {dimension_numbers = #tpu.dot_dimension_numbers<[1], [1], [0], [0], [0, 0, 1, 0], [], []>} : vector<8x8xf32>, vector<8x8xf32>, vector<8x8xf32> -> vector<8x8xf32>
    %cst_21 = arith.constant dense<0xFF800000> : vector<8xf32>
    %63 = vector.multi_reduction <maximumf>, %62, %cst_21 [1] : vector<8x8xf32> to vector<8xf32>
    %64 = vector.shape_cast %63 : vector<8xf32> to vector<8x1xf32>
    %65 = vector.broadcast %64 : vector<8x1xf32> to vector<8x8xf32>
    %66 = arith.subf %62, %65 : vector<8x8xf32>
    %67 = math.exp %66 : vector<8x8xf32>
    %cst_22 = arith.constant dense<0.000000e+00> : vector<8xf32>
    %68 = vector.multi_reduction <add>, %67, %cst_22 [1] : vector<8x8xf32> to vector<8xf32>
    %69 = vector.shape_cast %68 : vector<8xf32> to vector<8x1xf32>
    %70 = tpu.reciprocal %69 {approx = true} : vector<8x1xf32> -> vector<8x1xf32>
    %71 = vector.broadcast %70 : vector<8x1xf32> to vector<8x8xf32>
    %72 = arith.mulf %67, %71 : vector<8x8xf32>
    %cst_23 = arith.constant dense<0.000000e+00> : vector<8x8xf32>
    %73 = tpu.matmul %72, %61, %cst_23 {dimension_numbers = #tpu.dot_dimension_numbers<[1], [0], [0], [1], [0, 0, 1, 1], [], []>} : vector<8x8xf32>, vector<8x8xf32>, vector<8x8xf32> -> vector<8x8xf32>
    %74 = tpu.concatenate %28, %43, %58, %73 in 1 : vector<8x8xf32>, vector<8x8xf32>, vector<8x8xf32>, vector<8x8xf32> -> vector<8x32xf32>
    %75 = vector.extract_strided_slice %11 {offsets = [8, 0], sizes = [8, 8], strides = [1, 1]} : vector<16x32xf32> to vector<8x8xf32>
    %76 = vector.extract_strided_slice %12 {offsets = [8, 0], sizes = [8, 8], strides = [1, 1]} : vector<16x32xf32> to vector<8x8xf32>
    %77 = vector.extract_strided_slice %13 {offsets = [8, 0], sizes = [8, 8], strides = [1, 1]} : vector<16x32xf32> to vector<8x8xf32>
    %cst_24 = arith.constant dense<0.000000e+00> : vector<8x8xf32>
    %78 = tpu.matmul %75, %76, %cst_24 {dimension_numbers = #tpu.dot_dimension_numbers<[1], [1], [0], [0], [0, 0, 1, 0], [], []>} : vector<8x8xf32>, vector<8x8xf32>, vector<8x8xf32> -> vector<8x8xf32>
    %cst_25 = arith.constant dense<0xFF800000> : vector<8xf32>
    %79 = vector.multi_reduction <maximumf>, %78, %cst_25 [1] : vector<8x8xf32> to vector<8xf32>
    %80 = vector.shape_cast %79 : vector<8xf32> to vector<8x1xf32>
    %81 = vector.broadcast %80 : vector<8x1xf32> to vector<8x8xf32>
    %82 = arith.subf %78, %81 : vector<8x8xf32>
    %83 = math.exp %82 : vector<8x8xf32>
    %cst_26 = arith.constant dense<0.000000e+00> : vector<8xf32>
    %84 = vector.multi_reduction <add>, %83, %cst_26 [1] : vector<8x8xf32> to vector<8xf32>
    %85 = vector.shape_cast %84 : vector<8xf32> to vector<8x1xf32>
    %86 = tpu.reciprocal %85 {approx = true} : vector<8x1xf32> -> vector<8x1xf32>
    %87 = vector.broadcast %86 : vector<8x1xf32> to vector<8x8xf32>
    %88 = arith.mulf %83, %87 : vector<8x8xf32>
    %cst_27 = arith.constant dense<0.000000e+00> : vector<8x8xf32>
    %89 = tpu.matmul %88, %77, %cst_27 {dimension_numbers = #tpu.dot_dimension_numbers<[1], [0], [0], [1], [0, 0, 1, 1], [], []>} : vector<8x8xf32>, vector<8x8xf32>, vector<8x8xf32> -> vector<8x8xf32>
    %90 = vector.extract_strided_slice %11 {offsets = [8, 8], sizes = [8, 8], strides = [1, 1]} : vector<16x32xf32> to vector<8x8xf32>
    %91 = vector.extract_strided_slice %12 {offsets = [8, 8], sizes = [8, 8], strides = [1, 1]} : vector<16x32xf32> to vector<8x8xf32>
    %92 = vector.extract_strided_slice %13 {offsets = [8, 8], sizes = [8, 8], strides = [1, 1]} : vector<16x32xf32> to vector<8x8xf32>
    %cst_28 = arith.constant dense<0.000000e+00> : vector<8x8xf32>
    %93 = tpu.matmul %90, %91, %cst_28 {dimension_numbers = #tpu.dot_dimension_numbers<[1], [1], [0], [0], [0, 0, 1, 0], [], []>} : vector<8x8xf32>, vector<8x8xf32>, vector<8x8xf32> -> vector<8x8xf32>
    %cst_29 = arith.constant dense<0xFF800000> : vector<8xf32>
    %94 = vector.multi_reduction <maximumf>, %93, %cst_29 [1] : vector<8x8xf32> to vector<8xf32>
    %95 = vector.shape_cast %94 : vector<8xf32> to vector<8x1xf32>
    %96 = vector.broadcast %95 : vector<8x1xf32> to vector<8x8xf32>
    %97 = arith.subf %93, %96 : vector<8x8xf32>
    %98 = math.exp %97 : vector<8x8xf32>
    %cst_30 = arith.constant dense<0.000000e+00> : vector<8xf32>
    %99 = vector.multi_reduction <add>, %98, %cst_30 [1] : vector<8x8xf32> to vector<8xf32>
    %100 = vector.shape_cast %99 : vector<8xf32> to vector<8x1xf32>
    %101 = tpu.reciprocal %100 {approx = true} : vector<8x1xf32> -> vector<8x1xf32>
    %102 = vector.broadcast %101 : vector<8x1xf32> to vector<8x8xf32>
    %103 = arith.mulf %98, %102 : vector<8x8xf32>
    %cst_31 = arith.constant dense<0.000000e+00> : vector<8x8xf32>
    %104 = tpu.matmul %103, %92, %cst_31 {dimension_numbers = #tpu.dot_dimension_numbers<[1], [0], [0], [1], [0, 0, 1, 1], [], []>} : vector<8x8xf32>, vector<8x8xf32>, vector<8x8xf32> -> vector<8x8xf32>
    %105 = vector.extract_strided_slice %11 {offsets = [8, 16], sizes = [8, 8], strides = [1, 1]} : vector<16x32xf32> to vector<8x8xf32>
    %106 = vector.extract_strided_slice %12 {offsets = [8, 16], sizes = [8, 8], strides = [1, 1]} : vector<16x32xf32> to vector<8x8xf32>
    %107 = vector.extract_strided_slice %13 {offsets = [8, 16], sizes = [8, 8], strides = [1, 1]} : vector<16x32xf32> to vector<8x8xf32>
    %cst_32 = arith.constant dense<0.000000e+00> : vector<8x8xf32>
    %108 = tpu.matmul %105, %106, %cst_32 {dimension_numbers = #tpu.dot_dimension_numbers<[1], [1], [0], [0], [0, 0, 1, 0], [], []>} : vector<8x8xf32>, vector<8x8xf32>, vector<8x8xf32> -> vector<8x8xf32>
    %cst_33 = arith.constant dense<0xFF800000> : vector<8xf32>
    %109 = vector.multi_reduction <maximumf>, %108, %cst_33 [1] : vector<8x8xf32> to vector<8xf32>
    %110 = vector.shape_cast %109 : vector<8xf32> to vector<8x1xf32>
    %111 = vector.broadcast %110 : vector<8x1xf32> to vector<8x8xf32>
    %112 = arith.subf %108, %111 : vector<8x8xf32>
    %113 = math.exp %112 : vector<8x8xf32>
    %cst_34 = arith.constant dense<0.000000e+00> : vector<8xf32>
    %114 = vector.multi_reduction <add>, %113, %cst_34 [1] : vector<8x8xf32> to vector<8xf32>
    %115 = vector.shape_cast %114 : vector<8xf32> to vector<8x1xf32>
    %116 = tpu.reciprocal %115 {approx = true} : vector<8x1xf32> -> vector<8x1xf32>
    %117 = vector.broadcast %116 : vector<8x1xf32> to vector<8x8xf32>
    %118 = arith.mulf %113, %117 : vector<8x8xf32>
    %cst_35 = arith.constant dense<0.000000e+00> : vector<8x8xf32>
    %119 = tpu.matmul %118, %107, %cst_35 {dimension_numbers = #tpu.dot_dimension_numbers<[1], [0], [0], [1], [0, 0, 1, 1], [], []>} : vector<8x8xf32>, vector<8x8xf32>, vector<8x8xf32> -> vector<8x8xf32>
    %120 = vector.extract_strided_slice %11 {offsets = [8, 24], sizes = [8, 8], strides = [1, 1]} : vector<16x32xf32> to vector<8x8xf32>
    %121 = vector.extract_strided_slice %12 {offsets = [8, 24], sizes = [8, 8], strides = [1, 1]} : vector<16x32xf32> to vector<8x8xf32>
    %122 = vector.extract_strided_slice %13 {offsets = [8, 24], sizes = [8, 8], strides = [1, 1]} : vector<16x32xf32> to vector<8x8xf32>
    %cst_36 = arith.constant dense<0.000000e+00> : vector<8x8xf32>
    %123 = tpu.matmul %120, %121, %cst_36 {dimension_numbers = #tpu.dot_dimension_numbers<[1], [1], [0], [0], [0, 0, 1, 0], [], []>} : vector<8x8xf32>, vector<8x8xf32>, vector<8x8xf32> -> vector<8x8xf32>
    %cst_37 = arith.constant dense<0xFF800000> : vector<8xf32>
    %124 = vector.multi_reduction <maximumf>, %123, %cst_37 [1] : vector<8x8xf32> to vector<8xf32>
    %125 = vector.shape_cast %124 : vector<8xf32> to vector<8x1xf32>
    %126 = vector.broadcast %125 : vector<8x1xf32> to vector<8x8xf32>
    %127 = arith.subf %123, %126 : vector<8x8xf32>
    %128 = math.exp %127 : vector<8x8xf32>
    %cst_38 = arith.constant dense<0.000000e+00> : vector<8xf32>
    %129 = vector.multi_reduction <add>, %128, %cst_38 [1] : vector<8x8xf32> to vector<8xf32>
    %130 = vector.shape_cast %129 : vector<8xf32> to vector<8x1xf32>
    %131 = tpu.reciprocal %130 {approx = true} : vector<8x1xf32> -> vector<8x1xf32>
    %132 = vector.broadcast %131 : vector<8x1xf32> to vector<8x8xf32>
    %133 = arith.mulf %128, %132 : vector<8x8xf32>
    %cst_39 = arith.constant dense<0.000000e+00> : vector<8x8xf32>
    %134 = tpu.matmul %133, %122, %cst_39 {dimension_numbers = #tpu.dot_dimension_numbers<[1], [0], [0], [1], [0, 0, 1, 1], [], []>} : vector<8x8xf32>, vector<8x8xf32>, vector<8x8xf32> -> vector<8x8xf32>
    %135 = tpu.concatenate %89, %104, %119, %134 in 1 : vector<8x8xf32>, vector<8x8xf32>, vector<8x8xf32>, vector<8x8xf32> -> vector<8x32xf32>
    %136 = tpu.concatenate %74, %135 in 0 : vector<8x32xf32>, vector<8x32xf32> -> vector<16x32xf32>
    %c48 = arith.constant 48 : index
    %c0_40 = arith.constant 0 : index
    %137 = vector.load %arg1[%c48, %c0_40] : memref<144x128xf32, #tpu.memory_space<vmem>>, vector<32x32xf32>
    %cst_41 = arith.constant dense<0.000000e+00> : vector<16x32xf32>
    %138 = tpu.matmul %136, %137, %cst_41 {dimension_numbers = #tpu.dot_dimension_numbers<[1], [0], [0], [1], [0, 0, 1, 1], [], []>} : vector<16x32xf32>, vector<32x32xf32>, vector<16x32xf32> -> vector<16x32xf32>
    %c2 = arith.constant 2 : index
    %c0_42 = arith.constant 0 : index
    %139 = vector.load %arg2[%c2, %c0_42] : memref<8x128xf32, #tpu.memory_space<vmem>>, vector<1x32xf32>
    %140 = vector.broadcast %139 : vector<1x32xf32> to vector<16x32xf32>
    %141 = arith.addf %138, %140 : vector<16x32xf32>
    %c80 = arith.constant 80 : index
    %c0_43 = arith.constant 0 : index
    %142 = vector.load %arg1[%c80, %c0_43] : memref<144x128xf32, #tpu.memory_space<vmem>>, vector<32x32xf32>
    %cst_44 = arith.constant dense<0.000000e+00> : vector<16x32xf32>
    %143 = tpu.matmul %141, %142, %cst_44 {dimension_numbers = #tpu.dot_dimension_numbers<[1], [0], [0], [1], [0, 0, 1, 1], [], []>} : vector<16x32xf32>, vector<32x32xf32>, vector<16x32xf32> -> vector<16x32xf32>
    %c3 = arith.constant 3 : index
    %c0_45 = arith.constant 0 : index
    %144 = vector.load %arg2[%c3, %c0_45] : memref<8x128xf32, #tpu.memory_space<vmem>>, vector<1x32xf32>
    %145 = vector.broadcast %144 : vector<1x32xf32> to vector<16x32xf32>
    %146 = arith.addf %143, %145 : vector<16x32xf32>
    %cst_46 = arith.constant 0.000000e+00 : f32
    %147 = vector.broadcast %cst_46 : f32 to vector<16x32xf32>
    %148 = arith.maximumf %146, %147 : vector<16x32xf32>
    %c112 = arith.constant 112 : index
    %c0_47 = arith.constant 0 : index
    %149 = vector.load %arg1[%c112, %c0_47] : memref<144x128xf32, #tpu.memory_space<vmem>>, vector<32x128xf32>
    %cst_48 = arith.constant dense<0.000000e+00> : vector<16x128xf32>
    %150 = tpu.matmul %148, %149, %cst_48 {dimension_numbers = #tpu.dot_dimension_numbers<[1], [0], [0], [1], [0, 0, 1, 1], [], []>} : vector<16x32xf32>, vector<32x128xf32>, vector<16x128xf32> -> vector<16x128xf32>
    %c4 = arith.constant 4 : index
    %c0_49 = arith.constant 0 : index
    %151 = vector.load %arg2[%c4, %c0_49] : memref<8x128xf32, #tpu.memory_space<vmem>>, vector<1x128xf32>
    %152 = vector.broadcast %151 : vector<1x128xf32> to vector<16x128xf32>
    %153 = arith.addf %150, %152 : vector<16x128xf32>
    %c0_50 = arith.constant 0 : index
    %c0_51 = arith.constant 0 : index
    %154 = vector.load %arg3[%c0_50, %c0_51] : memref<16x128xf32, #tpu.memory_space<vmem>>, vector<16x128xf32>
    tpu.vector_store %arg3[%c0_50, %c0_51], %153 {strides = array<i32>} : memref<16x128xf32, #tpu.memory_space<vmem>>, vector<16x128xf32>,
    return
  }
}

</mosaic_0001>

<bundles_post_ra>
// kernel: adaptanet_forward.1
= control target key start
LH: loop header
LB: loop body
LE: loop exit
PB: predicated region body
PF: predicated region fallthrough
CT: control target
= control target key end

     0   :  { %8 = vsyncpa [#allocation3], 0  ;;  %s2179_s12 = smov [#allocation2]   ;;  %s2416_s0 = inlined_call_operand.vmem [shape: f32[16,16], index: 0, kind: input, shape index: {}]   ;;  %s2417_s1 = inlined_call_operand.hbm [shape: f32[144,128], index: 1, kind: input, shape index: {}]   ;;  %s2418_s2 = inlined_call_operand.vmem [shape: f32[8,128], index: 2, kind: input, shape index: {}]   ;;  %s2419_s3 = inlined_call_operand.vmem [shape: f32[16,128], index: 3, kind: output, shape index: {}]  }
   0x1   :  { %s16_s13 = sshll.u32 %s2179_s12, 4  ;;  %s2155_s16 = scalar_lea.hbm %s2417_s1, 2304  ;;  %s17_s13 = int_to_ptr.vmem [resolvable:$true] %s16_s13 }
   0x2   :  { %p2156_p0 = scmp.ne.s32.totalorder %s2417_s1, %s2155_s16  ;;  %p2159_p1 = scmp.lt.u32.totalorder %s2155_s16, %s2417_s1 }
   0x4   :  { %p2161_p2 = pnand %p2159_p1, %p2156_p0 }
   0x6   :  { %2164 = shalt.err (!%p2161_p2)
}
   0x7   :  { %s2165_s21 = scalar_lea.vmem %s17_s13, 2304  ;;  %p2170_p4 = scmp.lt.s32.totalorder %s17_s13, %s17_s13 }
   0x8   :  { %p2166_p3 = scmp.ne.s32.totalorder %s17_s13, %s2165_s21  ;;  %p2171_p5 = scmp.lt.s32.totalorder %s2165_s21, %s2165_s21 }
   0xa   :  { %p2172_p6 = por %p2171_p5, %p2170_p4 }
   0xc   :  { %p2173_p7 = pnand %p2172_p6, %p2166_p3 }
   0xe   :  { %2176 = shalt.err (!%p2173_p7)
}
   0xf   :  { %s2180_s22 = smov 128   ;;  %s2181_s23 = smov 8  }
  0x10   :  { %22 = dma.hbm_to_vmem [thread:$0]  %s2417_s1, 2304, %s17_s13, [#allocation3], %s2180_s22, %s2180_s22, %s2181_s23  }
  0x11   :  { %2177 = dma.done.wait [#allocation3], 2304  }
  0x12   :  { %2178 = vsyncadd [#allocation3], 4294964992  ;;  %vm37_vm0 = vcmask 130048   ;;  %v30_v0 = vld [vmem:[#allocation2] sm:$0xff]  ;;  %v31_v1 = vld [vmem:[#allocation2 + $0x8] sm:$0xff]  ;;  %vm128_vm1 = vcmask 261120  }
  0x13   :  { %v28_v2 = vld [vmem:[%s2416_s0] sm:$0xff]  ;;  %v2069_v3 = vpack.c.bf16 %v31_v1, %v30_v0  ;;  %v119_v4 = vld [vmem:[#allocation2 + $0x10] sm:$0xff]  ;;  %v120_v5 = vld [vmem:[#allocation2 + $0x18] sm:$0xff]  ;;  %v2182_v16 = vmov 0.0   ;;  %vm2183_vm2 = vmmov 0   ;;  %s2184_s5 = smov 120  }
  0x14   :  { %1942 = vmatprep.mubr.msk.f32.mxu0 %vm37_vm0, %v28_v2  ;;  %v2073_v6 = vpack.c.bf16 %v120_v5, %v119_v4  ;;  %v29_v7 = vld [vmem:[%s2416_s0 + $0x8] sm:$0xff]  ;;  %v121_v8 = vld [vmem:[#allocation2 + $0x20] sm:$0xff]  ;;  %s2185_s6 = smov 96   ;;  %s2186_s7 = smov 80   ;;  %vm213_vm3 = vcmask 64512   ;;  %vm884_vm4 = vcmask 195584  }
  0x15   :  { %2070 = vmatprep.subr.bf16.mxu0 %v2069_v3  ;;  %v122_v9 = vld [vmem:[#allocation2 + $0x28] sm:$0xff]  ;;  %v1839_v11 = vld [vmem:[%s2418_s2] ss:$0 sm:$0xff]  ;;  %v1842_v17 = vld [vmem:[%s2418_s2 + $0x1] ss:$0 sm:$0xff]  ;;  %s2187_s8 = smov 88  }
  0x16   :  { %2072 = vmatpush3.bf16.msra.mxu0 %v2069_v3  ;;  %2074 = vmatprep.subr.bf16.mxu1 %v2073_v6  ;;  %v2077_v10 = vpack.c.bf16 %v122_v9, %v121_v8  ;;  %s2188_s9 = smov 72   ;;  %s2189_s10 = smov 112  }
  0x17   :  { %2076 = vmatpush3.bf16.msra.mxu1 %v2073_v6  ;;  %1956 = vmatprep.subr.mxu0 %v2182_v16  ;;  %s2190_s11 = smov 104   ;;  %s2191_s12 = smov 56  }
  0x18   :  { %2078 = vmatprep.subr.bf16.mxu1 %v2077_v10  ;;  %s2192_s13 = smov 64   ;;  %s2193_s14 = smov 40  }
  0x19   :  { %1943 = vmatmul.mubr.msk.f32.vlgmr.msra.gmra.mrb[0].mxu0 %vm37_vm0, %v29_v7  ;;  %s2194_s15 = smov 48   ;;  %s2195_s16 = smov 16  }
  0x1a   :  { %1958 = vmatprep.mubr.msk.f32.mxu0 %vm2183_vm2, %v2182_v16  ;;  %s2196_s17 = smov 24  }
  0x1b   :  { %2080 = vmatpush3.bf16.msra.mxu1 %v2077_v10 }
  0x1c   :  { %1966 = vmatprep.subr.mxu1 %v2182_v16 }
  0xec   :  { %v1944_v12 = vpop.f32.mrb[0].mxu0 }
  0xed   :  { %v110_v13 = vpop.f32.mrb[1].mxu0  ;;  %v116_v15 = vadd.f32 %v1944_v12, %v1839_v11 }
  0xee   :  { %v111_v14 = vadd.f32 %v1839_v11, %v110_v13 }
  0xf0   :  { %1953 = vmatprep.mubr.msk.f32.mxu1 %vm128_vm1, %v111_v14 }
  0xf1   :  { %1954 = vmatmul.mubr.msk.f32.vlgmr.msra.gmra.mrb[0].mxu1 %vm128_vm1, %v116_v15 }
  0xf2   :  { %1968 = vmatprep.mubr.msk.f32.mxu1 %vm2183_vm2, %v2182_v16 }
 0x1c4   :  { %v1955_v18 = vpop.f32.mrb[0].mxu1 }
 0x1c5   :  { %v201_v19 = vpop.f32.mrb[1].mxu1  ;;  %v2260_v21 = vadd.f32 %v1955_v18, %v1842_v17 }
 0x1c6   :  { %v2252_v20 = vadd.f32 %v1842_v17, %v201_v19 }
 0x1c8   :  { %375 = vrot.lane.b32.xlu1 %v2252_v20, %s2184_s5  ;;  %211 = vrot.lane.b32.xlu0 %v2252_v20, %s2185_s6 }
 0x1cc   :  { %542 = vrot.lane.b32.xlu1 %v2252_v20, %s2186_s7  ;;  %377 = vrot.lane.b32.xlu0 %v2252_v20, %s2187_s8 }
 0x1d0   :  { %707 = vrot.lane.b32.xlu1 %v2252_v20, %s2188_s9  ;;  %540 = vrot.lane.b32.xlu0 %v2252_v20, %s2189_s10 }
 0x1d4   :  { %887 = vrot.lane.b32.xlu1 %v2260_v21, %s2185_s6  ;;  %705 = vrot.lane.b32.xlu0 %v2252_v20, %s2190_s11 }
 0x1d8   :  { %1050 = vrot.lane.b32.xlu1 %v2260_v21, %s2184_s5  ;;  %1052 = vrot.lane.b32.xlu0 %v2260_v21, %s2187_s8 }
 0x1dc   :  { %1215 = vrot.lane.b32.xlu1 %v2260_v21, %s2189_s10  ;;  %1217 = vrot.lane.b32.xlu0 %v2260_v21, %s2186_s7 }
 0x1e0   :  { %1380 = vrot.lane.b32.xlu1 %v2260_v21, %s2190_s11  ;;  %1382 = vrot.lane.b32.xlu0 %v2260_v21, %s2188_s9 }
 0x1e4   :  { %464 = vrot.lane.b32.xlu1 %v2252_v20, %s2191_s12  ;;  %299 = vrot.lane.b32.xlu0 %v2252_v20, %s2192_s13 }
 0x23a   :  { %v376_v22 = vpop.permute.xlu1 %375  ;;  %v212_v23 = vpop.permute.xlu0 %211 }
 0x23b   :  { %1957 = vmatpush3.xpose.msk.msra.mxu0 %vm213_vm3, %v212_v23 }
 0x23c   :  { %1961 = vmatprep.subr.mxu0 %v2182_v16 }
 0x23e   :  { %v543_v24 = vpop.permute.xlu1 %542  ;;  %1959 = vmatmul.mubr.msk.f32.vlgmr.msra.gmra.mrb[2].mxu0 %vm213_vm3, %v2252_v20  ;;  %v378_v25 = vpop.permute.xlu0 %377 }
 0x23f   :  { %1967 = vmatpush3.xpose.msk.msra.mxu1 %vm213_vm3, %v378_v25  ;;  %1963 = vmatprep.mubr.msk.f32.mxu0 %vm2183_vm2, %v2182_v16 }
 0x240   :  { %1976 = vmatprep.subr.mxu1 %v2182_v16 }
 0x242   :  { %v708_v26 = vpop.permute.xlu1 %707  ;;  %1969 = vmatmul.mubr.msk.f32.vlgmr.msra.gmra.mrb[2].mxu1 %vm213_vm3, %v376_v22  ;;  %v541_v27 = vpop.permute.xlu0 %540 }
 0x243   :  { %1977 = vmatpush3.xpose.msk.msra.mxu1 %vm213_vm3, %v543_v24  ;;  %1978 = vmatprep.mubr.msk.f32.mxu1 %vm2183_vm2, %v2182_v16 }
 0x244   :  { %1986 = vmatprep.subr.mxu1 %v2182_v16 }
 0x246   :  { %1979 = vmatmul.mubr.msk.f32.vlgmr.msra.gmra.mrb[4].mxu1 %vm213_vm3, %v541_v27  ;;  %v706_v28 = vpop.permute.xlu0 %705  ;;  %v888_v29 = vpop.permute.xlu1 %887 }
 0x247   :  { %1987 = vmatpush3.xpose.msk.msra.mxu1 %vm213_vm3, %v708_v26  ;;  %1988 = vmatprep.mubr.msk.f32.mxu1 %vm2183_vm2, %v2182_v16 }
 0x248   :  { %1996 = vmatprep.subr.mxu1 %v2182_v16 }
 0x24a   :  { %1989 = vmatmul.mubr.msk.f32.vlgmr.msra.gmra.mrb[6].mxu1 %vm213_vm3, %v706_v28  ;;  %v1053_v30 = vpop.permute.xlu0 %1052  ;;  %v1051_v31 = vpop.permute.xlu1 %1050 }
 0x24b   :  { %1997 = vmatpush3.xpose.msk.msra.mxu1 %vm213_vm3, %v888_v29  ;;  %1998 = vmatprep.mubr.msk.f32.mxu1 %vm2183_vm2, %v2182_v16 }
 0x24c   :  { %2006 = vmatprep.subr.mxu1 %v2182_v16 }
 0x24e   :  { %1999 = vmatmul.mubr.msk.f32.vlgmr.msra.gmra.mrb[8].mxu1 %vm213_vm3, %v2260_v21  ;;  %v1218_v32 = vpop.permute.xlu0 %1217  ;;  %v1216_v34 = vpop.permute.xlu1 %1215 }
 0x24f   :  { %2007 = vmatpush3.xpose.msk.msra.mxu1 %vm213_vm3, %v1053_v30  ;;  %2008 = vmatprep.mubr.msk.f32.mxu1 %vm2183_vm2, %v2182_v16 }
 0x250   :  { %2016 = vmatprep.subr.mxu1 %v2182_v16 }
 0x252   :  { %2009 = vmatmul.mubr.msk.f32.vlgmr.msra.gmra.mrb[10].mxu1 %vm213_vm3, %v1051_v31  ;;  %v1383_v33 = vpop.permute.xlu0 %1382  ;;  %v1381_v36 = vpop.permute.xlu1 %1380 }
 0x253   :  { %2017 = vmatpush3.xpose.msk.msra.mxu1 %vm213_vm3, %v1218_v32  ;;  %2018 = vmatprep.mubr.msk.f32.mxu1 %vm2183_vm2, %v2182_v16 }
 0x254   :  { %2026 = vmatprep.subr.mxu1 %v2182_v16 }
 0x256   :  { %2019 = vmatmul.mubr.msk.f32.vlgmr.msra.gmra.mrb[12].mxu1 %vm213_vm3, %v1216_v34  ;;  %v300_v35 = vpop.permute.xlu0 %299  ;;  %v2326_v61 = vpop.permute.xlu1 %464 }
 0x257   :  { %1962 = vmatpush3.msra.mxu0 %v300_v35  ;;  %2027 = vmatpush3.xpose.msk.msra.mxu1 %vm213_vm3, %v1383_v33 }
 0x258   :  { %2028 = vmatprep.mubr.msk.f32.mxu1 %vm2183_vm2, %v2182_v16  ;;  %1971 = vmatprep.subr.mxu0 %v2182_v16 }
 0x25a   :  { %2029 = vmatmul.mubr.msk.f32.vlgmr.msra.gmra.mrb[14].mxu1 %vm213_vm3, %v1381_v36 }
 0x311   :  { %v284_v37 = vpop.f32.mrb[2].mxu0 }
 0x312   :  { %v1960_v38 = vpop.f32.mrb[3].mxu0  ;;  %v288_v39 = vsel %vm213_vm3, %v284_v37, -inf }
 0x313   :  { %289 = vmax.xlane.f32.xlu0 %v288_v39 }
 0x315   :  { %v449_v40 = vpop.f32.mrb[2].mxu1 }
 0x316   :  { %v1970_v41 = vpop.f32.mrb[3].mxu1  ;;  %v453_v42 = vsel %vm213_vm3, %v449_v40, -inf }
 0x317   :  { %454 = vmax.xlane.f32.xlu1 %v453_v42 }
 0x319   :  { %v614_v43 = vpop.f32.mrb[4].mxu1 }
 0x31a   :  { %v1980_v44 = vpop.f32.mrb[5].mxu1  ;;  %v618_v45 = vsel %vm213_vm3, %v614_v43, -inf }
 0x31b   :  { %619 = vmax.xlane.f32.xlu0 %v618_v45 }
 0x31d   :  { %v779_v46 = vpop.f32.mrb[6].mxu1 }
 0x31e   :  { %v1990_v47 = vpop.f32.mrb[7].mxu1  ;;  %v783_v48 = vsel %vm213_vm3, %v779_v46, -inf }
 0x31f   :  { %784 = vmax.xlane.f32.xlu0 %v783_v48 }
 0x321   :  { %v959_v49 = vpop.f32.mrb[8].mxu1 }
 0x322   :  { %v2000_v50 = vpop.f32.mrb[9].mxu1  ;;  %v963_v51 = vsel %vm213_vm3, %v959_v49, -inf }
 0x323   :  { %964 = vmax.xlane.f32.xlu1 %v963_v51 }
 0x325   :  { %v1124_v52 = vpop.f32.mrb[10].mxu1 }
 0x326   :  { %v2010_v53 = vpop.f32.mrb[11].mxu1  ;;  %v1128_v54 = vsel %vm213_vm3, %v1124_v52, -inf }
 0x327   :  { %1129 = vmax.xlane.f32.xlu0 %v1128_v54 }
 0x329   :  { %v1289_v55 = vpop.f32.mrb[12].mxu1 }
 0x32a   :  { %v2020_v56 = vpop.f32.mrb[13].mxu1  ;;  %v1293_v57 = vsel %vm213_vm3, %v1289_v55, -inf }
 0x32b   :  { %1294 = vmax.xlane.f32.xlu1 %v1293_v57 }
 0x32d   :  { %v1454_v58 = vpop.f32.mrb[14].mxu1 }
 0x32e   :  { %v2030_v59 = vpop.f32.mrb[15].mxu1  ;;  %v1458_v60 = vsel %vm213_vm3, %v1454_v58, -inf }
 0x32f   :  { %1459 = vmax.xlane.f32.xlu0 %v1458_v60 }
 0x33c   :  { %794 = vrot.lane.b32.xlu1 %v2252_v20, %s2193_s14 }
 0x345   :  { %629 = vrot.lane.b32.xlu0 %v2252_v20, %s2194_s15 }
 0x3a0   :  { %v290_v62 = vpop.xlane.xlu0 %289 }
 0x3a1   :  { %v291_v63 = vsub.f32 %v284_v37, %v290_v62 }
 0x3a3   :  { %v292_v0 = vmul.f32 1.442695, %v291_v63 }
 0x3a4   :  { %v455_v1 = vpop.xlane.xlu1 %454 }
 0x3a5   :  { %2123 = vpow2.f32 %v292_v0  ;;  %v456_v2 = vsub.f32 %v449_v40, %v455_v1 }
 0x3a7   :  { %v457_v3 = vmul.f32 1.442695, %v456_v2 }
 0x3a8   :  { %v620_v4 = vpop.xlane.xlu0 %619 }
 0x3a9   :  { %2125 = vpow2.f32 %v457_v3  ;;  %v621_v5 = vsub.f32 %v614_v43, %v620_v4 }
 0x3ab   :  { %v622_v6 = vmul.f32 1.442695, %v621_v5 }
 0x3ac   :  { %v785_v7 = vpop.xlane.xlu0 %784 }
 0x3ad   :  { %2127 = vpow2.f32 %v622_v6  ;;  %v786_v8 = vsub.f32 %v779_v46, %v785_v7 }
 0x3af   :  { %v2124_v9 = vpop.eup %2123  ;;  %v787_v10 = vmul.f32 1.442695, %v786_v8 }
 0x3b0   :  { %v294_v11 = vsel %vm213_vm3, %v2124_v9, 0.0  ;;  %v965_v19 = vpop.xlane.xlu1 %964 }
 0x3b1   :  { %2129 = vpow2.f32 %v787_v10  ;;  %295 = vadd.xlane.f32.xlu1 %v294_v11  ;;  %v966_v20 = vsub.f32 %v959_v49, %v965_v19 }
 0x3b3   :  { %v2126_v12 = vpop.eup %2125  ;;  %v967_v25 = vmul.f32 1.442695, %v966_v20 }
 0x3b4   :  { %v459_v13 = vsel %vm213_vm3, %v2126_v12, 0.0  ;;  %v1130_v22 = vpop.xlane.xlu0 %1129 }
 0x3b5   :  { %460 = vadd.xlane.f32.xlu0 %v459_v13  ;;  %v1131_v24 = vsub.f32 %v1124_v52, %v1130_v22  ;;  %2131 = vpow2.f32 %v967_v25  ;;  %v1560_v13 = vld [vmem:[#allocation2 + $0x30] sm:$0xff] }
 0x3b6   :  { %v1650_v22 = vld [vmem:[#allocation2 + $0x50] sm:$0xff] }
 0x3b7   :  { %v2128_v14 = vpop.eup %2127  ;;  %v1132_v28 = vmul.f32 1.442695, %v1131_v24 }
 0x3b8   :  { %v624_v15 = vsel %vm213_vm3, %v2128_v14, 0.0  ;;  %v1295_v23 = vpop.xlane.xlu1 %1294 }
 0x3b9   :  { %625 = vadd.xlane.f32.xlu1 %v624_v15  ;;  %v1296_v26 = vsub.f32 %v1289_v55, %v1295_v23  ;;  %2133 = vpow2.f32 %v1132_v28  ;;  %v1562_v15 = vld [vmem:[#allocation2 + $0x40] sm:$0xff]  ;;  %v1651_v23 = vld [vmem:[#allocation2 + $0x58] sm:$0xff] }
 0x3ba   :  { %v2089_v24 = vpack.c.bf16 %v1651_v23, %v1650_v22 }
 0x3bb   :  { %v2331_v17 = vpop.eup %2129  ;;  %v1297_v29 = vmul.f32 1.442695, %v1296_v26 }
 0x3bc   :  { %v789_v18 = vsel %vm213_vm3, %v2331_v17, 0.0  ;;  %v1460_v27 = vpop.xlane.xlu0 %1459  ;;  %v795_v40 = vpop.permute.xlu1 %794 }
 0x3bd   :  { %790 = vadd.xlane.f32.xlu0 %v789_v18  ;;  %v1461_v30 = vsub.f32 %v1454_v58, %v1460_v27  ;;  %2135 = vpow2.f32 %v1297_v29 }
 0x3bf   :  { %v1462_v31 = vmul.f32 1.442695, %v1461_v30  ;;  %v2132_v32 = vpop.eup %2131 }
 0x3c0   :  { %v969_v34 = vsel %vm213_vm3, %v2132_v32, 0.0  ;;  %v630_v41 = vpop.permute.xlu0 %629 }
 0x3c1   :  { %2137 = vpow2.f32 %v1462_v31 }
 0x3c3   :  { %v2339_v33 = vpop.eup %2133 }
 0x3c4   :  { %v1134_v37 = vsel %vm213_vm3, %v2339_v33, 0.0 }
 0x3c7   :  { %v2342_v35 = vpop.eup %2135 }
 0x3c8   :  { %v1299_v36 = vsel %vm213_vm3, %v2342_v35, 0.0 }
 0x3ca   :  { %1139 = vrot.lane.b32.xlu1 %v2260_v21, %s2191_s12 }
 0x3cb   :  { %v2348_v38 = vpop.eup %2137 }
 0x3cc   :  { %v1464_v39 = vsel %vm213_vm3, %v2348_v38, 0.0 }
 0x3d3   :  { %974 = vrot.lane.b32.xlu0 %v2260_v21, %s2192_s13 }
 0x3ee   :  { %970 = vadd.xlane.f32.xlu1 %v969_v34 }
 0x3f2   :  { %1300 = vadd.xlane.f32.xlu1 %v1299_v36  ;;  %1135 = vadd.xlane.f32.xlu0 %v1134_v37 }
 0x3f6   :  { %1465 = vadd.xlane.f32.xlu1 %v1464_v39 }
 0x407   :  { %1469 = vrot.lane.b32.xlu1 %v2260_v21, %s2193_s14 }
 0x408   :  { %1304 = vrot.lane.b32.xlu0 %v2260_v21, %s2194_s15 }
 0x43e   :  { %v296_v42 = vpop.xlane.xlu1 %295 }
 0x43f   :  { %2139 = vrcp.f32 %v296_v42 }
 0x442   :  { %v461_v43 = vpop.xlane.xlu0 %460 }
 0x443   :  { %2141 = vrcp.f32 %v461_v43  ;;  %v1652_v43 = vld [vmem:[#allocation2 + $0x60] sm:$0xff] }
 0x446   :  { %v626_v44 = vpop.xlane.xlu1 %625 }
 0x447   :  { %2143 = vrcp.f32 %v626_v44  ;;  %v1653_v44 = vld [vmem:[#allocation2 + $0x68] sm:$0xff] }
 0x449   :  { %v2140_v45 = vpop.eup %2139 }
 0x44a   :  { %v298_v46 = vmul.f32 %v2140_v45, %v2124_v9  ;;  %v791_v47 = vpop.xlane.xlu0 %790  ;;  %v1140_v54 = vpop.permute.xlu1 %1139  ;;  %v2093_v45 = vpack.c.bf16 %v1653_v44, %v1652_v43 }
 0x44b   :  { %2145 = vrcp.f32 %v791_v47  ;;  %v1743_v47 = vld [vmem:[#allocation2 + $0x78] sm:$0xff] }
 0x44c   :  { %1964 = vmatmul.mubr.msk.f32.vlgmr.msra.gmra.mrb[4].mxu0 %vm213_vm3, %v298_v46  ;;  %v1742_v46 = vld [vmem:[#allocation2 + $0x70] sm:$0xff] }
 0x44d   :  { %v2142_v48 = vpop.eup %2141  ;;  %1972 = vmatpush3.msra.mxu0 %v2326_v61  ;;  %1973 = vmatprep.mubr.msk.f32.mxu0 %vm2183_vm2, %v2182_v16 }
 0x44e   :  { %v463_v21 = vmul.f32 %v2142_v48, %v2126_v12  ;;  %1981 = vmatprep.subr.mxu0 %v2182_v16  ;;  %v975_v53 = vpop.permute.xlu0 %974  ;;  %v2097_v48 = vpack.c.bf16 %v1743_v47, %v1742_v46 }
 0x450   :  { %1974 = vmatmul.mubr.msk.f32.vlgmr.msra.gmra.mrb[6].mxu0 %vm213_vm3, %v463_v21  ;;  %v1869_v21 = vld [vmem:[%s2418_s2 + $0x2] ss:$0 sm:$0xff] }
 0x451   :  { %v2144_v49 = vpop.eup %2143  ;;  %1982 = vmatpush3.msra.mxu0 %v630_v41  ;;  %1983 = vmatprep.mubr.msk.f32.mxu0 %vm2183_vm2, %v2182_v16 }
 0x452   :  { %v628_v50 = vmul.f32 %v2144_v49, %v2128_v14  ;;  %1991 = vmatprep.subr.mxu0 %v2182_v16 }
 0x454   :  { %1984 = vmatmul.mubr.msk.f32.vlgmr.msra.gmra.mrb[8].mxu0 %vm213_vm3, %v628_v50 }
 0x455   :  { %v2146_v51 = vpop.eup %2145  ;;  %1992 = vmatpush3.msra.mxu0 %v795_v40  ;;  %1993 = vmatprep.mubr.msk.f32.mxu0 %vm2183_vm2, %v2182_v16 }
 0x456   :  { %v793_v52 = vmul.f32 %v2146_v51, %v2331_v17  ;;  %2001 = vmatprep.subr.mxu0 %v2182_v16  ;;  %v1563_v17 = vld [vmem:[#allocation2 + $0x48] sm:$0xff] }
 0x457   :  { %v2085_v18 = vpack.c.bf16 %v1563_v17, %v1562_v15 }
 0x458   :  { %1994 = vmatmul.mubr.msk.f32.vlgmr.msra.gmra.mrb[10].mxu0 %vm213_vm3, %v793_v52 }
 0x459   :  { %2002 = vmatpush3.msra.mxu0 %v975_v53  ;;  %2003 = vmatprep.mubr.msk.f32.mxu0 %vm2183_vm2, %v2182_v16  ;;  %v1744_v53 = vld [vmem:[#allocation2 + $0x80] sm:$0xff] }
 0x45a   :  { %2011 = vmatprep.subr.mxu0 %v2182_v16 }
 0x47b   :  { %v971_v55 = vpop.xlane.xlu1 %970 }
 0x47c   :  { %2147 = vrcp.f32 %v971_v55 }
 0x47f   :  { %v1301_v56 = vpop.xlane.xlu1 %1300  ;;  %v1136_v57 = vpop.xlane.xlu0 %1135 }
 0x480   :  { %2149 = vrcp.f32 %v1136_v57 }
 0x481   :  { %2151 = vrcp.f32 %v1301_v56  ;;  %v1872_v56 = vld [vmem:[%s2418_s2 + $0x3] ss:$0 sm:$0xff] }
 0x483   :  { %v1466_v58 = vpop.xlane.xlu1 %1465  ;;  %v1305_v0 = vpop.permute.xlu0 %1304 }
 0x484   :  { %2153 = vrcp.f32 %v1466_v58 }
 0x486   :  { %v2148_v59 = vpop.eup %2147 }
 0x487   :  { %v973_v60 = vmul.f32 %v2148_v59, %v2132_v32  ;;  %v1470_v3 = vpop.permute.xlu1 %1469 }
 0x489   :  { %2004 = vmatmul.mubr.msk.f32.vlgmr.msra.gmra.mrb[12].mxu0 %vm213_vm3, %v973_v60 }
 0x48a   :  { %2012 = vmatpush3.msra.mxu0 %v1140_v54  ;;  %2013 = vmatprep.mubr.msk.f32.mxu0 %vm2183_vm2, %v2182_v16  ;;  %v2150_v61 = vpop.eup %2149  ;;  %v1745_v54 = vld [vmem:[#allocation2 + $0x88] sm:$0xff] }
 0x48b   :  { %2021 = vmatprep.subr.mxu0 %v2182_v16  ;;  %v1138_v62 = vmul.f32 %v2150_v61, %v2339_v33  ;;  %v2152_v63 = vpop.eup %2151  ;;  %v2101_v55 = vpack.c.bf16 %v1745_v54, %v1744_v53 }
 0x48c   :  { %v1303_v1 = vmul.f32 %v2152_v63, %v2342_v35  ;;  %v1875_v63 = vld [vmem:[%s2418_s2 + $0x4] ss:$0 sm:$0xff] }
 0x48d   :  { %2014 = vmatmul.mubr.msk.f32.vlgmr.msra.gmra.mrb[14].mxu0 %vm213_vm3, %v1138_v62 }
 0x48e   :  { %2022 = vmatpush3.msra.mxu0 %v1305_v0  ;;  %2023 = vmatprep.mubr.msk.f32.mxu0 %vm2183_vm2, %v2182_v16  ;;  %v2154_v2 = vpop.eup %2153 }
 0x48f   :  { %2031 = vmatprep.subr.mxu0 %v2182_v16  ;;  %v1468_v4 = vmul.f32 %v2154_v2, %v2348_v38 }
 0x491   :  { %2024 = vmatmul.mubr.msk.f32.vlgmr.msra.gmra.mrb[16].mxu0 %vm213_vm3, %v1303_v1 }
 0x492   :  { %2032 = vmatpush3.msra.mxu0 %v1470_v3  ;;  %2033 = vmatprep.mubr.msk.f32.mxu0 %vm2183_vm2, %v2182_v16  ;;  %v1561_v16 = vld [vmem:[#allocation2 + $0x38] sm:$0xff] }
 0x493   :  { %v2081_v14 = vpack.c.bf16 %v1561_v16, %v1560_v13  ;;  %2090 = vmatprep.subr.bf16.mxu0 %v2089_v24 }
 0x495   :  { %2034 = vmatmul.mubr.msk.f32.vlgmr.msra.gmra.mrb[18].mxu0 %vm213_vm3, %v1468_v4  ;;  %2082 = vmatprep.subr.bf16.mxu1 %v2081_v14 }
 0x496   :  { %2084 = vmatpush3.bf16.msra.mxu1 %v2081_v14  ;;  %2092 = vmatpush3.bf16.msra.mxu0 %v2089_v24 }
 0x497   :  { %2086 = vmatprep.subr.bf16.mxu1 %v2085_v18  ;;  %2094 = vmatprep.subr.bf16.mxu0 %v2093_v45 }
 0x49a   :  { %2088 = vmatpush3.bf16.msra.mxu1 %v2085_v18  ;;  %2096 = vmatpush3.bf16.msra.mxu0 %v2093_v45 }
 0x49b   :  { %2098 = vmatprep.subr.bf16.mxu1 %v2097_v48 }
 0x51f   :  { %v371_v5 = vpop.f32.mrb[4].mxu0 }
 0x520   :  { %v1965_v6 = vpop.f32.mrb[5].mxu0 }
 0x523   :  { %v536_v7 = vpop.f32.mrb[6].mxu0 }
 0x524   :  { %871 = vrot.lane.b32.xlu0 %v536_v7, %s2181_s23  ;;  %v1975_v8 = vpop.f32.mrb[7].mxu0 }
 0x527   :  { %v701_v9 = vpop.f32.mrb[8].mxu0 }
 0x528   :  { %875 = vrot.lane.b32.xlu1 %v701_v9, %s2195_s16  ;;  %v1985_v10 = vpop.f32.mrb[9].mxu0 }
 0x52b   :  { %v866_v11 = vpop.f32.mrb[10].mxu0 }
 0x52c   :  { %879 = vrot.lane.b32.xlu1 %v866_v11, %s2196_s17  ;;  %v1995_v12 = vpop.f32.mrb[11].mxu0 }
 0x55c   :  { %v1046_v19 = vpop.f32.mrb[12].mxu0 }
 0x55d   :  { %v2005_v20 = vpop.f32.mrb[13].mxu0 }
 0x560   :  { %v1211_v25 = vpop.f32.mrb[14].mxu0 }
 0x561   :  { %1546 = vrot.lane.b32.xlu0 %v1211_v25, %s2181_s23  ;;  %v2015_v26 = vpop.f32.mrb[15].mxu0 }
 0x564   :  { %v1376_v27 = vpop.f32.mrb[16].mxu0 }
 0x565   :  { %1550 = vrot.lane.b32.xlu0 %v1376_v27, %s2195_s16  ;;  %v2025_v28 = vpop.f32.mrb[17].mxu0 }
 0x568   :  { %v1541_v29 = vpop.f32.mrb[18].mxu0 }
 0x569   :  { %1554 = vrot.lane.b32.xlu1 %v1541_v29, %s2196_s17  ;;  %v2035_v30 = vpop.f32.mrb[19].mxu0 }
 0x596   :  { %v872_v31 = vpop.permute.xlu0 %871 }
 0x597   :  { %v882_v33 = vsel %vm213_vm3, %v371_v5, %v872_v31 }
 0x59a   :  { %v876_v32 = vpop.permute.xlu1 %875 }
 0x59b   :  { %v883_v34 = vsel %vm37_vm0, %v882_v33, %v876_v32 }
 0x59e   :  { %v880_v35 = vpop.permute.xlu1 %879 }
 0x59f   :  { %v885_v36 = vsel %vm884_vm4, %v883_v34, %v880_v35 }
 0x5a0   :  { %2044 = vmatprep.mubr.msk.f32.mxu1 %vm128_vm1, %v885_v36 }
 0x5d3   :  { %v1547_v37 = vpop.permute.xlu0 %1546 }
 0x5d4   :  { %v1557_v39 = vsel %vm213_vm3, %v1046_v19, %v1547_v37 }
 0x5d7   :  { %v1551_v38 = vpop.permute.xlu0 %1550 }
 0x5d8   :  { %v1558_v40 = vsel %vm37_vm0, %v1557_v39, %v1551_v38 }
 0x5db   :  { %v1555_v41 = vpop.permute.xlu1 %1554 }
 0x5dc   :  { %v1559_v42 = vsel %vm884_vm4, %v1558_v40, %v1555_v41 }
 0x5dd   :  { %2045 = vmatmul.mubr.msk.f32.vlgmr.msra.gmra.mrb[16].mxu1 %vm128_vm1, %v1559_v42 }
 0x5de   :  { %2100 = vmatpush3.bf16.msra.mxu1 %v2097_v48 }
 0x5df   :  { %2102 = vmatprep.subr.bf16.mxu1 %v2101_v55 }
 0x5e2   :  { %2104 = vmatpush3.bf16.msra.mxu1 %v2101_v55 }
 0x6b0   :  { %v2046_v49 = vpop.f32.mrb[16].mxu1 }
 0x6b1   :  { %v1641_v50 = vpop.f32.mrb[17].mxu1  ;;  %v1647_v52 = vadd.f32 %v2046_v49, %v1869_v21 }
 0x6b2   :  { %v1642_v51 = vadd.f32 %v1869_v21, %v1641_v50 }
 0x6b4   :  { %2055 = vmatprep.mubr.msk.f32.mxu0 %vm128_vm1, %v1642_v51 }
 0x6b5   :  { %2056 = vmatmul.mubr.msk.f32.vlgmr.msra.gmra.mrb[20].mxu0 %vm128_vm1, %v1647_v52 }
 0x788   :  { %v2057_v57 = vpop.f32.mrb[20].mxu0 }
 0x789   :  { %v1737_v58 = vadd.f32 %v2057_v57, %v1872_v56  ;;  %v1731_v59 = vpop.f32.mrb[21].mxu0 }
 0x78a   :  { %v1732_v60 = vadd.f32 %v1872_v56, %v1731_v59 }
 0x78b   :  { %v1741_v62 = vmax.f32 %v1737_v58, 0.0 }
 0x78c   :  { %v1740_v61 = vmax.f32 %v1732_v60, 0.0 }
 0x78e   :  { %2066 = vmatprep.mubr.msk.f32.mxu1 %vm128_vm1, %v1740_v61 }
 0x78f   :  { %2067 = vmatmul.mubr.msk.f32.vlgmr.msra.gmra.mrb[18].mxu1 %vm128_vm1, %v1741_v62 }
 0x862   :  { %v2068_v0 = vpop.f32.mrb[18].mxu1 }
 0x863   :  { %v1829_v1 = vadd.f32 %v2068_v0, %v1875_v63  ;;  %v1823_v2 = vpop.f32.mrb[19].mxu1 }
 0x864   :  { %v1824_v3 = vadd.f32 %v1875_v63, %v1823_v2 }
 0x865   :  { %1833 = vst [vmem:[%s2419_s3 + $0x8] sm:$0xff] %v1829_v1 }
 0x866   :  { %1832 = vst [vmem:[%s2419_s3] sm:$0xff] %v1824_v3 }
 0x867   :  { %1838 = vsyncpa [#allocation3], 1 }

</bundles_post_ra>
